<compile_context>
chip_gen: v7x
topology: tpu7x:2x2x1
jax: 0.10.0
libtpu: 0.0.40
codegen_flags: <defaults>
</compile_context>

<pallas_src>
import math

import jax
import jax.numpy as jnp
from jax import lax
from jax.experimental import pallas as pl
from jax.experimental.pallas import tpu as pltpu


def make_cross_attention_kernel(n_heads: int, d_head: int, scale: float, compute_dtype):
    def kernel(x_ref, y_ref,
               wq_ref, bq_ref,
               wk_ref, bk_ref,
               wv_ref, bv_ref,
               wo_ref, bo_ref,
               out_ref):
        x = x_ref[0]                      # (tq, d_embed)   compute_dtype
        y = y_ref[0]                      # (Skv, d_cross)  compute_dtype

        # --- in-projections: full-width MXU matmuls, f32 accumulation, f32 bias ---
        q = jnp.dot(x, wq_ref[...], preferred_element_type=jnp.float32) + bq_ref[...]
        k = jnp.dot(y, wk_ref[...], preferred_element_type=jnp.float32) + bk_ref[...]
        v = jnp.dot(y, wv_ref[...], preferred_element_type=jnp.float32) + bv_ref[...]

        # Fold 1/sqrt(d_head) into q: touches Sq*d_embed elements once instead of
        # H*Sq*Skv score elements.
        q = q * scale

        tq = q.shape[0]
        skv = k.shape[0]

        # Heads to a leading batch axis: one reshape+transpose per tensor instead of
        # per-head lane slices and a lane-axis concatenate.
        qh = q.astype(compute_dtype).reshape(tq, n_heads, d_head).transpose(1, 0, 2)   # (H, tq, dh)
        kh = k.astype(compute_dtype).reshape(skv, n_heads, d_head).transpose(1, 0, 2)  # (H, Skv, dh)
        vh = v.astype(compute_dtype).reshape(skv, n_heads, d_head).transpose(1, 0, 2)  # (H, Skv, dh)

        # Scores: batched contraction of the last dims (no explicit kh.T transpose).
        s = lax.dot_general(qh, kh, (((2,), (2,)), ((0,), (0,))),
                            preferred_element_type=jnp.float32)        # (H, tq, Skv) f32

        # Numerically-stable softmax; all elementwise math in f32 (v5e has no bf16
        # VPU/EUP path).  Divide via approximate reciprocal on the EUP slot.
        m = jnp.max(s, axis=-1, keepdims=True)
        p = jnp.exp(s - m)
        denom = jnp.sum(p, axis=-1, keepdims=True)
        p = p * pl.reciprocal(denom, approx=True)

        # Weighted values per head (batched over the leading head axis).
        o = lax.dot_general(p.astype(compute_dtype), vh, (((2,), (1,)), ((0,), (0,))),
                            preferred_element_type=jnp.float32)        # (H, tq, dh) f32

        # Back to (tq, d_embed) and out-projection.
        o = o.transpose(1, 0, 2).reshape(tq, n_heads * d_head)
        out = jnp.dot(o.astype(compute_dtype), wo_ref[...],
                      preferred_element_type=jnp.float32) + bo_ref[...]
        out_ref[0] = out.astype(out_ref.dtype)

    return kernel


def cross_attention_pallas(x, y, params, n_heads: int, *,
                           block_q: int = 256,
                           compute_dtype=jnp.bfloat16):
    B, Sq, d_embed = x.shape
    _, Skv, d_cross = y.shape
    d_head = d_embed // n_heads
    scale = 1.0 / math.sqrt(d_head)
    out_dtype = x.dtype

    wq, bq, wk, bk, wv, bv, wo, bo = params

    block_q = min(block_q, Sq)
    n_q_blocks = pl.cdiv(Sq, block_q)

    # Cast MXU operands once in the wrapper (halves HBM traffic in bf16).
    # Biases stay f32 and are added after the f32 accumulation.
    xc = x.astype(compute_dtype)
    yc = y.astype(compute_dtype)
    wqc = wq.astype(compute_dtype)
    wkc = wk.astype(compute_dtype)
    wvc = wv.astype(compute_dtype)
    woc = wo.astype(compute_dtype)

    kernel = make_cross_attention_kernel(n_heads, d_head, scale, compute_dtype)

    rep2 = lambda b, i: (0, 0)   # weights / biases: same block for every grid step
    grid_spec = pltpu.PrefetchScalarGridSpec(
        num_scalar_prefetch=0,
        grid=(B, n_q_blocks),
        in_specs=[
            pl.BlockSpec((1, block_q, d_embed), lambda b, i: (b, i, 0)),   # x tile
            pl.BlockSpec((1, Skv, d_cross),     lambda b, i: (b, 0, 0)),   # y (resident across q tiles)
            pl.BlockSpec((d_embed, d_embed), rep2),                        # wq
            pl.BlockSpec((1, d_embed), rep2),                              # bq
            pl.BlockSpec((d_cross, d_embed), rep2),                        # wk
            pl.BlockSpec((1, d_embed), rep2),                              # bk
            pl.BlockSpec((d_cross, d_embed), rep2),                        # wv
            pl.BlockSpec((1, d_embed), rep2),                              # bv
            pl.BlockSpec((d_embed, d_embed), rep2),                        # wo
            pl.BlockSpec((1, d_embed), rep2),                              # bo
        ],
        out_specs=pl.BlockSpec((1, block_q, d_embed), lambda b, i: (b, i, 0)),
    )

    # Advisory cost estimate so XLA schedules the surrounding graph sensibly.
    c_bytes = jnp.dtype(compute_dtype).itemsize
    o_bytes = jnp.dtype(out_dtype).itemsize
    flops = int(
        2 * B * Sq * d_embed * d_embed * 2                     # q + out projections
        + 2 * B * n_q_blocks * 2 * Skv * d_cross * d_embed     # k, v projections (per q tile)
        + 2 * B * Sq * Skv * d_embed * 2)                      # scores + p@v
    transcendentals = int(B * n_heads * Sq * Skv)
    bytes_accessed = int(
        B * Sq * d_embed * c_bytes + B * Skv * d_cross * c_bytes
        + (2 * d_embed * d_embed + 2 * d_cross * d_embed) * c_bytes
        + 4 * d_embed * 4
        + B * Sq * d_embed * o_bytes)

    return pl.pallas_call(
        kernel,
        out_shape=jax.ShapeDtypeStruct((B, Sq, d_embed), out_dtype),
        grid_spec=grid_spec,
        compiler_params=pltpu.CompilerParams(
            dimension_semantics=("parallel", "parallel"),
            vmem_limit_bytes=64 * 1024 * 1024),
        cost_estimate=pl.CostEstimate(
            flops=flops,
            transcendentals=transcendentals,
            bytes_accessed=bytes_accessed),
    )(xc, yc, wqc, bq, wkc, bk, wvc, bv, woc, bo)


def cross_attention_reference(x, y, params, n_heads: int):
    """Pure-JAX f32 reference mirroring the PyTorch forward."""
    wq, bq, wk, bk, wv, bv, wo, bo = params
    B, Sq, d_embed = x.shape
    d_head = d_embed // n_heads

    q = x @ wq + bq[0]
    k = y @ wk + bk[0]
    v = y @ wv + bv[0]

    def split(t):  # (B, S, D) -> (B, H, S, dh)
        Bn, S, _ = t.shape
        return t.reshape(Bn, S, n_heads, d_head).transpose(0, 2, 1, 3)

    qh, kh, vh = split(q), split(k), split(v)
    w = jnp.einsum('bhqd,bhkd->bhqk', qh, kh) / math.sqrt(d_head)
    w = jax.nn.softmax(w, axis=-1)
    o = jnp.einsum('bhqk,bhkd->bhqd', w, vh)
    o = o.transpose(0, 2, 1, 3).reshape(B, Sq, d_embed)
    return o @ wo + bo[0]


if __name__ == "__main__":
    # Small shapes consistent with the module.
    B = 2
    n_heads = 4
    d_embed = 32
    d_cross = 16
    seq_q = 8
    seq_kv = 8

    key = jax.random.PRNGKey(0)
    keys = jax.random.split(key, 10)

    x = jax.random.normal(keys[0], (B, seq_q, d_embed), dtype=jnp.float32)
    y = jax.random.normal(keys[1], (B, seq_kv, d_cross), dtype=jnp.float32)

    # Deterministic parameter init (Linear: weight (D_in, D_out), bias (1, D_out)).
    s = 0.05
    wq = s * jax.random.normal(keys[2], (d_embed, d_embed), dtype=jnp.float32)
    bq = s * jax.random.normal(keys[3], (1, d_embed), dtype=jnp.float32)
    wk = s * jax.random.normal(keys[4], (d_cross, d_embed), dtype=jnp.float32)
    bk = s * jax.random.normal(keys[5], (1, d_embed), dtype=jnp.float32)
    wv = s * jax.random.normal(keys[6], (d_cross, d_embed), dtype=jnp.float32)
    bv = s * jax.random.normal(keys[7], (1, d_embed), dtype=jnp.float32)
    wo = s * jax.random.normal(keys[8], (d_embed, d_embed), dtype=jnp.float32)
    bo = s * jax.random.normal(keys[9], (1, d_embed), dtype=jnp.float32)

    params = (wq, bq, wk, bk, wv, bv, wo, bo)

    ref = cross_attention_reference(x, y, params, n_heads)

    # f32 MXU path: only drift source is the approximate EUP reciprocal in softmax.
    out_f32 = jax.block_until_ready(
        cross_attention_pallas(x, y, params, n_heads, compute_dtype=jnp.float32))
    assert out_f32.shape == (B, seq_q, d_embed)
    assert jnp.allclose(out_f32, ref, rtol=2e-3, atol=2e-3), "f32 mismatch vs reference"

    # bf16 MXU path (f32 accumulation): small expected numeric drift, looser tolerance.
    out_bf16 = jax.block_until_ready(
        cross_attention_pallas(x, y, params, n_heads, compute_dtype=jnp.bfloat16))
    assert out_bf16.shape == (B, seq_q, d_embed)
    assert jnp.allclose(out_bf16, ref, rtol=3e-2, atol=3e-2), "bf16 mismatch vs reference"

    print("KERNEL_OK")
</pallas_src>

<mosaic_0001>
module attributes {stable_mosaic.version = 11 : i64} {
  func.func @kernel(%arg0: i32, %arg1: i32, %arg2: memref<1x8x32xf32, #tpu.memory_space<vmem>>, %arg3: memref<1x8x16xf32, #tpu.memory_space<vmem>>, %arg4: memref<32x32xf32, #tpu.memory_space<vmem>>, %arg5: memref<1x32xf32, #tpu.memory_space<vmem>>, %arg6: memref<16x32xf32, #tpu.memory_space<vmem>>, %arg7: memref<1x32xf32, #tpu.memory_space<vmem>>, %arg8: memref<16x32xf32, #tpu.memory_space<vmem>>, %arg9: memref<1x32xf32, #tpu.memory_space<vmem>>, %arg10: memref<32x32xf32, #tpu.memory_space<vmem>>, %arg11: memref<1x32xf32, #tpu.memory_space<vmem>>, %arg12: memref<1x8x32xf32, #tpu.memory_space<vmem>>) attributes {dimension_semantics = [#tpu.dimension_semantics<parallel>, #tpu.dimension_semantics<parallel>], iteration_bounds = array<i64: 2, 1>, scalar_prefetch = 0 : i64, scratch_operands = 0 : i64, tpu.core_type = #tpu.core_type<tc>, window_params = [{transform_indices = @transform_0, window_bounds = array<i64: 1, 8, 32>}, {transform_indices = @transform_1, window_bounds = array<i64: 1, 8, 16>}, {pipeline_mode = #tpu.pipeline_mode<synchronous>, transform_indices = @transform_2, window_bounds = array<i64: 32, 32>}, {pipeline_mode = #tpu.pipeline_mode<synchronous>, transform_indices = @transform_3, window_bounds = array<i64: 1, 32>}, {pipeline_mode = #tpu.pipeline_mode<synchronous>, transform_indices = @transform_4, window_bounds = array<i64: 16, 32>}, {pipeline_mode = #tpu.pipeline_mode<synchronous>, transform_indices = @transform_5, window_bounds = array<i64: 1, 32>}, {pipeline_mode = #tpu.pipeline_mode<synchronous>, transform_indices = @transform_6, window_bounds = array<i64: 16, 32>}, {pipeline_mode = #tpu.pipeline_mode<synchronous>, transform_indices = @transform_7, window_bounds = array<i64: 1, 32>}, {pipeline_mode = #tpu.pipeline_mode<synchronous>, transform_indices = @transform_8, window_bounds = array<i64: 32, 32>}, {pipeline_mode = #tpu.pipeline_mode<synchronous>, transform_indices = @transform_9, window_bounds = array<i64: 1, 32>}, {transform_indices = @transform_10, window_bounds = array<i64: 1, 8, 32>}]} {
    %c0 = arith.constant 0 : index
    %c0_0 = arith.constant 0 : index
    %c0_1 = arith.constant 0 : index
    %0 = vector.load %arg2[%c0, %c0_0, %c0_1] : memref<1x8x32xf32, #tpu.memory_space<vmem>>, vector<1x8x32xf32>
    %1 = vector.shape_cast %0 : vector<1x8x32xf32> to vector<8x32xf32>
    %c0_2 = arith.constant 0 : index
    %c0_3 = arith.constant 0 : index
    %c0_4 = arith.constant 0 : index
    %2 = vector.load %arg3[%c0_2, %c0_3, %c0_4] : memref<1x8x16xf32, #tpu.memory_space<vmem>>, vector<1x8x16xf32>
    %3 = vector.shape_cast %2 : vector<1x8x16xf32> to vector<8x16xf32>
    %c0_5 = arith.constant 0 : index
    %c0_6 = arith.constant 0 : index
    %4 = vector.load %arg4[%c0_5, %c0_6] : memref<32x32xf32, #tpu.memory_space<vmem>>, vector<32x32xf32>
    %cst = arith.constant dense<0.000000e+00> : vector<8x32xf32>
    %5 = tpu.matmul %1, %4, %cst {dimension_numbers = #tpu.dot_dimension_numbers<[1], [0], [0], [1], [0, 0, 1, 1], [], []>} : vector<8x32xf32>, vector<32x32xf32>, vector<8x32xf32> -> vector<8x32xf32>
    %c0_7 = arith.constant 0 : index
    %c0_8 = arith.constant 0 : index
    %6 = vector.load %arg5[%c0_7, %c0_8] : memref<1x32xf32, #tpu.memory_space<vmem>>, vector<1x32xf32>
    %7 = vector.broadcast %6 : vector<1x32xf32> to vector<8x32xf32>
    %8 = arith.addf %5, %7 : vector<8x32xf32>
    %c0_9 = arith.constant 0 : index
    %c0_10 = arith.constant 0 : index
    %9 = vector.load %arg6[%c0_9, %c0_10] : memref<16x32xf32, #tpu.memory_space<vmem>>, vector<16x32xf32>
    %cst_11 = arith.constant dense<0.000000e+00> : vector<8x32xf32>
    %10 = tpu.matmul %3, %9, %cst_11 {dimension_numbers = #tpu.dot_dimension_numbers<[1], [0], [0], [1], [0, 0, 1, 1], [], []>} : vector<8x16xf32>, vector<16x32xf32>, vector<8x32xf32> -> vector<8x32xf32>
    %c0_12 = arith.constant 0 : index
    %c0_13 = arith.constant 0 : index
    %11 = vector.load %arg7[%c0_12, %c0_13] : memref<1x32xf32, #tpu.memory_space<vmem>>, vector<1x32xf32>
    %12 = vector.broadcast %11 : vector<1x32xf32> to vector<8x32xf32>
    %13 = arith.addf %10, %12 : vector<8x32xf32>
    %c0_14 = arith.constant 0 : index
    %c0_15 = arith.constant 0 : index
    %14 = vector.load %arg8[%c0_14, %c0_15] : memref<16x32xf32, #tpu.memory_space<vmem>>, vector<16x32xf32>
    %cst_16 = arith.constant dense<0.000000e+00> : vector<8x32xf32>
    %15 = tpu.matmul %3, %14, %cst_16 {dimension_numbers = #tpu.dot_dimension_numbers<[1], [0], [0], [1], [0, 0, 1, 1], [], []>} : vector<8x16xf32>, vector<16x32xf32>, vector<8x32xf32> -> vector<8x32xf32>
    %c0_17 = arith.constant 0 : index
    %c0_18 = arith.constant 0 : index
    %16 = vector.load %arg9[%c0_17, %c0_18] : memref<1x32xf32, #tpu.memory_space<vmem>>, vector<1x32xf32>
    %17 = vector.broadcast %16 : vector<1x32xf32> to vector<8x32xf32>
    %18 = arith.addf %15, %17 : vector<8x32xf32>
    %cst_19 = arith.constant 0.353553385 : f32
    %19 = vector.broadcast %cst_19 : f32 to vector<8x32xf32>
    %20 = arith.mulf %8, %19 : vector<8x32xf32>
    %21 = vector.shape_cast %20 : vector<8x32xf32> to vector<8x4x8xf32>
    %22 = tpu.transpose %21, [1, 0, 2] : vector<8x4x8xf32> -> vector<4x8x8xf32>
    %23 = vector.shape_cast %13 : vector<8x32xf32> to vector<8x4x8xf32>
    %24 = tpu.transpose %23, [1, 0, 2] : vector<8x4x8xf32> -> vector<4x8x8xf32>
    %25 = vector.shape_cast %18 : vector<8x32xf32> to vector<8x4x8xf32>
    %26 = tpu.transpose %25, [1, 0, 2] : vector<8x4x8xf32> -> vector<4x8x8xf32>
    %cst_20 = arith.constant dense<0.000000e+00> : vector<4x8x8xf32>
    %27 = tpu.matmul %22, %24, %cst_20 {dimension_numbers = #tpu.dot_dimension_numbers<[2], [2], [1], [1], [0, 0, 0, 1, 1, 1], [0], [0]>} : vector<4x8x8xf32>, vector<4x8x8xf32>, vector<4x8x8xf32> -> vector<4x8x8xf32>
    %cst_21 = arith.constant dense<0xFF800000> : vector<4x8xf32>
    %28 = vector.multi_reduction <maximumf>, %27, %cst_21 [2] : vector<4x8x8xf32> to vector<4x8xf32>
    %29 = vector.shape_cast %28 : vector<4x8xf32> to vector<4x8x1xf32>
    %30 = vector.broadcast %29 : vector<4x8x1xf32> to vector<4x8x8xf32>
    %31 = arith.subf %27, %30 : vector<4x8x8xf32>
    %32 = math.exp %31 : vector<4x8x8xf32>
    %cst_22 = arith.constant dense<0.000000e+00> : vector<4x8xf32>
    %33 = vector.multi_reduction <add>, %32, %cst_22 [2] : vector<4x8x8xf32> to vector<4x8xf32>
    %34 = vector.shape_cast %33 : vector<4x8xf32> to vector<4x8x1xf32>
    %35 = tpu.reciprocal %34 {approx = true} : vector<4x8x1xf32> -> vector<4x8x1xf32>
    %36 = vector.broadcast %35 : vector<4x8x1xf32> to vector<4x8x8xf32>
    %37 = arith.mulf %32, %36 : vector<4x8x8xf32>
    %cst_23 = arith.constant dense<0.000000e+00> : vector<4x8x8xf32>
    %38 = tpu.matmul %37, %26, %cst_23 {dimension_numbers = #tpu.dot_dimension_numbers<[2], [1], [1], [2], [0, 0, 0, 1, 1, 2], [0], [0]>} : vector<4x8x8xf32>, vector<4x8x8xf32>, vector<4x8x8xf32> -> vector<4x8x8xf32>
    %39 = tpu.transpose %38, [1, 0, 2] : vector<4x8x8xf32> -> vector<8x4x8xf32>
    %40 = vector.shape_cast %39 : vector<8x4x8xf32> to vector<8x32xf32>
    %c0_24 = arith.constant 0 : index
    %c0_25 = arith.constant 0 : index
    %41 = vector.load %arg10[%c0_24, %c0_25] : memref<32x32xf32, #tpu.memory_space<vmem>>, vector<32x32xf32>
    %cst_26 = arith.constant dense<0.000000e+00> : vector<8x32xf32>
    %42 = tpu.matmul %40, %41, %cst_26 {dimension_numbers = #tpu.dot_dimension_numbers<[1], [0], [0], [1], [0, 0, 1, 1], [], []>} : vector<8x32xf32>, vector<32x32xf32>, vector<8x32xf32> -> vector<8x32xf32>
    %c0_27 = arith.constant 0 : index
    %c0_28 = arith.constant 0 : index
    %43 = vector.load %arg11[%c0_27, %c0_28] : memref<1x32xf32, #tpu.memory_space<vmem>>, vector<1x32xf32>
    %44 = vector.broadcast %43 : vector<1x32xf32> to vector<8x32xf32>
    %45 = arith.addf %42, %44 : vector<8x32xf32>
    %c0_29 = arith.constant 0 : index
    %c0_30 = arith.constant 0 : index
    %c0_31 = arith.constant 0 : index
    %46 = vector.load %arg12[%c0_29, %c0_30, %c0_31] : memref<1x8x32xf32, #tpu.memory_space<vmem>>, vector<1x8x32xf32>
    %47 = vector.shape_cast %46 : vector<1x8x32xf32> to vector<8x32xf32>
    %48 = vector.shape_cast %45 : vector<8x32xf32> to vector<1x8x32xf32>
    tpu.vector_store %arg12[%c0_29, %c0_30, %c0_31], %48 {strides = array<i32>} : memref<1x8x32xf32, #tpu.memory_space<vmem>>, vector<1x8x32xf32>,
    return
  }
  func.func @transform_0(%arg0: i32, %arg1: i32) -> (i32, i32, i32) {
    %c0_i32 = arith.constant 0 : i32
    %c0_i32_0 = arith.constant 0 : i32
    return %arg0, %arg1, %c0_i32 : i32, i32, i32
  }
  func.func @transform_1(%arg0: i32, %arg1: i32) -> (i32, i32, i32) {
    %c0_i32 = arith.constant 0 : i32
    %c0_i32_0 = arith.constant 0 : i32
    %c0_i32_1 = arith.constant 0 : i32
    return %arg0, %c0_i32, %c0_i32_0 : i32, i32, i32
  }
  func.func @transform_2(%arg0: i32, %arg1: i32) -> (i32, i32) {
    %c0_i32 = arith.constant 0 : i32
    %c0_i32_0 = arith.constant 0 : i32
    %c0_i32_1 = arith.constant 0 : i32
    return %c0_i32, %c0_i32_0 : i32, i32
  }
  func.func @transform_3(%arg0: i32, %arg1: i32) -> (i32, i32) {
    %c0_i32 = arith.constant 0 : i32
    %c0_i32_0 = arith.constant 0 : i32
    %c0_i32_1 = arith.constant 0 : i32
    return %c0_i32, %c0_i32_0 : i32, i32
  }
  func.func @transform_4(%arg0: i32, %arg1: i32) -> (i32, i32) {
    %c0_i32 = arith.constant 0 : i32
    %c0_i32_0 = arith.constant 0 : i32
    %c0_i32_1 = arith.constant 0 : i32
    return %c0_i32, %c0_i32_0 : i32, i32
  }
  func.func @transform_5(%arg0: i32, %arg1: i32) -> (i32, i32) {
    %c0_i32 = arith.constant 0 : i32
    %c0_i32_0 = arith.constant 0 : i32
    %c0_i32_1 = arith.constant 0 : i32
    return %c0_i32, %c0_i32_0 : i32, i32
  }
  func.func @transform_6(%arg0: i32, %arg1: i32) -> (i32, i32) {
    %c0_i32 = arith.constant 0 : i32
    %c0_i32_0 = arith.constant 0 : i32
    %c0_i32_1 = arith.constant 0 : i32
    return %c0_i32, %c0_i32_0 : i32, i32
  }
  func.func @transform_7(%arg0: i32, %arg1: i32) -> (i32, i32) {
    %c0_i32 = arith.constant 0 : i32
    %c0_i32_0 = arith.constant 0 : i32
    %c0_i32_1 = arith.constant 0 : i32
    return %c0_i32, %c0_i32_0 : i32, i32
  }
  func.func @transform_8(%arg0: i32, %arg1: i32) -> (i32, i32) {
    %c0_i32 = arith.constant 0 : i32
    %c0_i32_0 = arith.constant 0 : i32
    %c0_i32_1 = arith.constant 0 : i32
    return %c0_i32, %c0_i32_0 : i32, i32
  }
  func.func @transform_9(%arg0: i32, %arg1: i32) -> (i32, i32) {
    %c0_i32 = arith.constant 0 : i32
    %c0_i32_0 = arith.constant 0 : i32
    %c0_i32_1 = arith.constant 0 : i32
    return %c0_i32, %c0_i32_0 : i32, i32
  }
  func.func @transform_10(%arg0: i32, %arg1: i32) -> (i32, i32, i32) {
    %c0_i32 = arith.constant 0 : i32
    %c0_i32_0 = arith.constant 0 : i32
    return %arg0, %arg1, %c0_i32 : i32, i32, i32
  }
}

</mosaic_0001>

<bundles_post_ra>
// kernel: tpu_custom_call.1
= control target key start
LH: loop header
LB: loop body
LE: loop exit
PB: predicated region body
PF: predicated region fallthrough
CT: control target
= control target key end

     0   :  { %s3712_s0 = inlined_call_operand.hbm [shape: f32[2,8,32], index: 0, kind: input, shape index: {}]   ;;  %s3713_s1 = inlined_call_operand.hbm [shape: f32[2,8,16], index: 1, kind: input, shape index: {}]   ;;  %s3714_s2 = inlined_call_operand.hbm [shape: f32[32,32], index: 2, kind: input, shape index: {}]   ;;  %s3715_s3 = inlined_call_operand.hbm [shape: f32[1,32], index: 3, kind: input, shape index: {}]   ;;  %s3716_s4 = inlined_call_operand.hbm [shape: f32[16,32], index: 4, kind: input, shape index: {}]   ;;  %s3717_s5 = inlined_call_operand.hbm [shape: f32[1,32], index: 5, kind: input, shape index: {}]   ;;  %s3718_s6 = inlined_call_operand.hbm [shape: f32[16,32], index: 6, kind: input, shape index: {}]   ;;  %s3719_s7 = inlined_call_operand.hbm [shape: f32[1,32], index: 7, kind: input, shape index: {}]   ;;  %s3720_s8 = inlined_call_operand.hbm [shape: f32[32,32], index: 8, kind: input, shape index: {}]   ;;  %s3721_s9 = inlined_call_operand.hbm [shape: f32[1,32], index: 9, kind: input, shape index: {}]   ;;  %s3722_s10 = inlined_call_operand.hbm [shape: f32[2,8,32], index: 10, kind: output, shape index: {}]  }
   0x1   :  { %3732 = sst [smem:[#allocation30_spill]] %s3713_s1 }
   0x2   :  { %3733 = sst [smem:[#allocation31_spill]] %s3714_s2 }
   0x3   :  { %3734 = sst [smem:[#allocation32_spill]] %s3715_s3 }
   0x4   :  { %3735 = sst [smem:[#allocation33_spill]] %s3716_s4 }
   0x5   :  { %3736 = sst [smem:[#allocation34_spill]] %s3717_s5 }
   0x6   :  { %3737 = sst [smem:[#allocation35_spill]] %s3718_s6 }
   0x7   :  { %3738 = sst [smem:[#allocation36_spill]] %s3719_s7 }
   0x8   :  { %3739 = sst [smem:[#allocation37_spill]] %s3722_s10 }
   0x9   :  { %15 = vsyncpa [#allocation3], 0 }
   0xa   :  { %17 = vsyncpa [#allocation3 + $0x1], 0 }
   0xb   :  { %18 = vsyncpa [#allocation6], 0 }
   0xc   :  { %20 = vsyncpa [#allocation6 + $0x1], 0 }
   0xd   :  { %21 = vsyncpa [#allocation9], 0 }
   0xe   :  { %22 = vsyncpa [#allocation12], 0 }
   0xf   :  { %23 = vsyncpa [#allocation15], 0 }
  0x10   :  { %24 = vsyncpa [#allocation18], 0 }
  0x11   :  { %25 = vsyncpa [#allocation4], 0 }
  0x12   :  { %27 = vsyncpa [#allocation4 + $0x1], 0  ;;  %s3131_s13 = smov 0   ;;  %s3133_s14 = smov 0  }
  0x13   :  { %s3135_s15 = smov 0   ;;  %s3137_s16 = smov 0  }
  0x14   :  { %s3139_s17 = smov 0   ;;  %s3141_s18 = smov 0  }
  0x15 LB: > { %3740 = sst [smem:[#allocation28_spill]] %s3042_s16  ;;  %s3162_s19 = sadd.s32 4294967295, %s3050_s18   ;;  %s3050_s18 = sphi %s3141_s18, %s33_s18   ;;  %s3046_s17 = sphi %s3139_s17, %s3781_s17   ;;  %s3042_s16 = sphi %s3137_s16, %s3780_s16   ;;  %s3038_s15 = sphi %s3135_s15, %s3779_s15   ;;  %s3034_s14 = sphi %s3133_s14, %s3778_s14   ;;  %s3030_s13 = sphi %s3131_s13, %s3777_s13  }
  0x16   : > { %p2299_p0 = scmp.ge.s32.totalorder %s3050_s18, 1  ;;  %p3726_p1 = scmp.eq.s32.totalorder %s3162_s19, 0 }
  0x17   : > { %p300_p2 = scmp.lt.s32.totalorder %s3050_s18, 3  ;;  %s3052_s21 = smov [#allocation7]  }
  0x18   : > { %s312_s22 = sshll.u32 %s3052_s21, 4  ;;  %s3053_s24 = smov [#allocation8]   ;;  %s3171_s22 = int_to_ptr.vmem [resolvable:$true] %s312_s22 }
  0x19   : > { %p3167_p3 = pnand %p2299_p0, %p300_p2  ;;  %s326_s25 = sshll.u32 %s3053_s24, 4  ;;  %s3182_s25 = int_to_ptr.vmem [resolvable:$true] %s326_s25 }
  0x1a   : > { %s3054_s26 = smov [#allocation11]   ;;  %s3744_s2 = sld [smem:[#allocation31_spill]] }
  0x1b   : > { %s3741_s20 = scalar_select %p3167_p3, 1, 0 }
  0x1c   : > { %p2521_p4 = pneg %p3167_p3  ;;  %s3184_s27 = sshll.u32 %s3054_s26, 4  ;;  %s351_s27 = int_to_ptr.vmem [resolvable:$true] %s3184_s27 }
  0x1d   : > { %3742 = sst [smem:[#allocation29_spill]] %s3741_s20 }
  0x1e   : > { %p3178_p6 = pnand %p2521_p4, %p3726_p1 }
  0x20   : > { %s2660_s30 = scalar_lea.hbm %s3744_s2, 512  ;;  %p3194_p8 = pneg %p3178_p6 }
  0x21   : > { %p2661_p7 = scmp.ne.s32.totalorder %s3744_s2, %s2660_s30  ;;  %p2667_p11 = scmp.lt.u32.totalorder %s2660_s30, %s3744_s2 }
  0x23   : > { %p2663_p9 = pnand %p3194_p8, %p2661_p7 }
  0x25   : > { %p2664_p10 = pneg %p2663_p9 }
  0x27   : > { %p2669_p12 = pnand %p2667_p11, %p2664_p10 }
  0x29   : > { %2672 = shalt.err (!%p2669_p12)
}
  0x2a   : > { %s2673_s28 = scalar_lea.vmem %s3171_s22, 512  ;;  %p2681_p4 = scmp.lt.s32.totalorder %s3171_s22, %s3171_s22 }
  0x2b   : > { %p2674_p13 = scmp.ne.s32.totalorder %s3171_s22, %s2673_s28  ;;  %p2682_p5 = scmp.lt.s32.totalorder %s2673_s28, %s2673_s28 }
  0x2d   : > { %p2676_p0 = pnand %p2674_p13, %p3194_p8  ;;  %p2683_p7 = por %p2682_p5, %p2681_p4 }
  0x2f   : > { %p2677_p2 = pneg %p2676_p0 }
  0x31   : > { %p2684_p9 = pnand %p2683_p7, %p2677_p2 }
  0x33   : > { %2687 = shalt.err (!%p2684_p9)
}
  0x34   : > { %s3728_s29 = smov 128   ;;  %s3056_s30 = smov 8  }
  0x35   : > { %2524 = dma.hbm_to_vmem [thread:$0]  (!%p3178_p6), %s3744_s2, 512, %s3171_s22, [#allocation6], %s3728_s29, %s3728_s29, %s3056_s30  }
  0x36   : > { %s3746_s3 = sld [smem:[#allocation32_spill]] }
  0x3c   : > { %s2688_s28 = scalar_lea.hbm %s3746_s3, 16 }
  0x3d   : > { %p2689_p5 = scmp.ne.s32.totalorder %s3746_s3, %s2688_s28  ;;  %p2695_p12 = scmp.lt.u32.totalorder %s2688_s28, %s3746_s3 }
  0x3f   : > { %p2691_p10 = pnand %p2689_p5, %p3194_p8 }
  0x41   : > { %p2692_p11 = pneg %p2691_p10 }
  0x43   : > { %p2697_p13 = pnand %p2695_p12, %p2692_p11 }
  0x45   : > { %2700 = shalt.err (!%p2697_p13)
}
  0x46   : > { %s2701_s22 = scalar_lea.vmem %s3182_s25, 16  ;;  %s2708_s10 = scalar_lea.vmem %s3182_s25, 32 }
  0x47   : > { %p2702_p0 = scmp.ne.s32.totalorder %s3182_s25, %s2701_s22  ;;  %p2709_p7 = scmp.lt.s32.totalorder %s3182_s25, %s3182_s25 }
  0x48   : > { %p2710_p9 = scmp.lt.s32.totalorder %s2708_s10, %s2701_s22 }
  0x49   : > { %p2704_p2 = pnand %p2702_p0, %p3194_p8 }
  0x4a   : > { %p2711_p5 = por %p2710_p9, %p2709_p7 }
  0x4b   : > { %p2705_p4 = pneg %p2704_p2 }
  0x4d   : > { %p2712_p10 = pnand %p2711_p5, %p2705_p4 }
  0x4f   : > { %2715 = shalt.err (!%p2712_p10)
}
  0x50   : > { %2527 = dma.hbm_to_vmem [thread:$0]  (!%p3178_p6), %s3746_s3, 16, %s3182_s25, [#allocation9]  }
  0x51   : > { %s3747_s5 = sld [smem:[#allocation34_spill]] }
  0x57   : > { %s2716_s12 = scalar_lea.hbm %s3747_s5, 16 }
  0x58   : > { %p2717_p11 = scmp.ne.s32.totalorder %s3747_s5, %s2716_s12  ;;  %p2723_p0 = scmp.lt.u32.totalorder %s2716_s12, %s3747_s5 }
  0x5a   : > { %p2719_p12 = pnand %p2717_p11, %p3194_p8 }
  0x5c   : > { %p2720_p13 = pneg %p2719_p12 }
  0x5e   : > { %p2725_p2 = pnand %p2723_p0, %p2720_p13 }
  0x60   : > { %2728 = shalt.err (!%p2725_p2)
}
  0x61   : > { %s2729_s10 = scalar_lea.vmem %s351_s27, 16  ;;  %s2736_s25 = scalar_lea.vmem %s351_s27, 32 }
  0x62   : > { %p2730_p4 = scmp.ne.s32.totalorder %s351_s27, %s2729_s10  ;;  %p2737_p5 = scmp.lt.s32.totalorder %s351_s27, %s351_s27 }
  0x63   : > { %p2738_p10 = scmp.lt.s32.totalorder %s2736_s25, %s2729_s10 }
  0x64   : > { %p2732_p7 = pnand %p2730_p4, %p3194_p8 }
  0x65   : > { %p2739_p1 = por %p2738_p10, %p2737_p5 }
  0x66   : > { %p2733_p9 = pneg %p2732_p7 }
  0x68   : > { %p2740_p3 = pnand %p2739_p1, %p2733_p9 }
  0x6a   : > { %2743 = shalt.err (!%p2740_p3)
}
  0x6b   : > { %2533 = dma.hbm_to_vmem [thread:$0]  (!%p3178_p6), %s3747_s5, 16, %s351_s27, [#allocation12]  }
  0x6c   : > { %s3057_s20 = smov [#allocation14]   ;;  %s3058_s12 = smov [#allocation10]  }
  0x6d   : > { %s374_s11 = sshll.u32 %s3057_s20, 4  ;;  %s336_s24 = sshll.u32 %s3058_s12, 4  ;;  %s375_s11 = int_to_ptr.vmem [resolvable:$true] %s374_s11  ;;  %s337_s24 = int_to_ptr.vmem [resolvable:$true] %s336_s24 }
  0x6e   : > { %s3748_s7 = sld [smem:[#allocation36_spill]] }
  0x74   : > { %s2744_s22 = scalar_lea.hbm %s3748_s7, 16 }
  0x75   : > { %p2745_p1 = scmp.ne.s32.totalorder %s3748_s7, %s2744_s22  ;;  %p2751_p12 = scmp.lt.u32.totalorder %s2744_s22, %s3748_s7 }
  0x77   : > { %p2747_p3 = pnand %p2745_p1, %p3194_p8 }
  0x79   : > { %p2748_p11 = pneg %p2747_p3 }
  0x7b   : > { %p2753_p13 = pnand %p2751_p12, %p2748_p11 }
  0x7d   : > { %2756 = shalt.err (!%p2753_p13)
}
  0x7e   : > { %s2757_s27 = scalar_lea.vmem %s375_s11, 16  ;;  %s2764_s16 = scalar_lea.vmem %s375_s11, 32 }
  0x7f   : > { %p2758_p0 = scmp.ne.s32.totalorder %s375_s11, %s2757_s27  ;;  %p2765_p7 = scmp.lt.s32.totalorder %s375_s11, %s375_s11 }
  0x80   : > { %p2766_p9 = scmp.lt.s32.totalorder %s2764_s16, %s2757_s27 }
  0x81   : > { %p2760_p2 = pnand %p2758_p0, %p3194_p8 }
  0x82   : > { %p2767_p5 = por %p2766_p9, %p2765_p7 }
  0x83   : > { %p2761_p4 = pneg %p2760_p2 }
  0x85   : > { %p2768_p10 = pnand %p2767_p5, %p2761_p4 }
  0x87   : > { %2771 = shalt.err (!%p2768_p10)
}
  0x88   : > { %2539 = dma.hbm_to_vmem [thread:$0]  (!%p3178_p6), %s3748_s7, 16, %s375_s11, [#allocation15]  }
  0x89   : > { %s3749_s4 = sld [smem:[#allocation33_spill]] }
  0x8f   : > { %s2772_s28 = scalar_lea.hbm %s3749_s4, 256 }
  0x90   : > { %p2773_p1 = scmp.ne.s32.totalorder %s3749_s4, %s2772_s28  ;;  %p2779_p12 = scmp.lt.u32.totalorder %s2772_s28, %s3749_s4 }
  0x92   : > { %p2775_p3 = pnand %p2773_p1, %p3194_p8 }
  0x94   : > { %p2776_p11 = pneg %p2775_p3 }
  0x96   : > { %p2781_p13 = pnand %p2779_p12, %p2776_p11 }
  0x98   : > { %2784 = shalt.err (!%p2781_p13)
}
  0x99   : > { %s2785_s27 = scalar_lea.vmem %s337_s24, 256  ;;  %p2793_p7 = scmp.lt.s32.totalorder %s337_s24, %s337_s24 }
  0x9a   : > { %p2786_p0 = scmp.ne.s32.totalorder %s337_s24, %s2785_s27  ;;  %p2794_p9 = scmp.lt.s32.totalorder %s2785_s27, %s2785_s27 }
  0x9c   : > { %p2788_p2 = pnand %p2786_p0, %p3194_p8  ;;  %p2795_p5 = por %p2794_p9, %p2793_p7 }
  0x9e   : > { %p2789_p4 = pneg %p2788_p2 }
  0xa0   : > { %p2796_p10 = pnand %p2795_p5, %p2789_p4 }
  0xa2   : > { %2799 = shalt.err (!%p2796_p10)
}
  0xa3   : > { %s3750_s11 = smov 128   ;;  %s3059_s12 = smov [#allocation13]  }
  0xa4   : > { %2530 = dma.hbm_to_vmem [thread:$0]  (!%p3178_p6), %s3749_s4, 256, %s337_s24, [#allocation9], %s3750_s11, %s3750_s11, %s3056_s30  }
  0xa5   : > { %s360_s29 = sshll.u32 %s3059_s12, 4  ;;  %s3060_s26 = smov [#allocation16]   ;;  %s361_s29 = int_to_ptr.vmem [resolvable:$true] %s360_s29 }
  0xa6   : > { %s384_s28 = sshll.u32 %s3060_s26, 4  ;;  %s3751_s6 = sld [smem:[#allocation35_spill]]  ;;  %s385_s28 = int_to_ptr.vmem [resolvable:$true] %s384_s28 }
  0xac   : > { %s2800_s25 = scalar_lea.hbm %s3751_s6, 256 }
  0xad   : > { %p2801_p1 = scmp.ne.s32.totalorder %s3751_s6, %s2800_s25  ;;  %p2807_p12 = scmp.lt.u32.totalorder %s2800_s25, %s3751_s6 }
  0xaf   : > { %p2803_p3 = pnand %p2801_p1, %p3194_p8 }
  0xb1   : > { %p2804_p11 = pneg %p2803_p3 }
  0xb3   : > { %p2809_p13 = pnand %p2807_p12, %p2804_p11 }
  0xb5   : > { %2812 = shalt.err (!%p2809_p13)
}
  0xb6   : > { %s2813_s24 = scalar_lea.vmem %s361_s29, 256  ;;  %p2821_p7 = scmp.lt.s32.totalorder %s361_s29, %s361_s29 }
  0xb7   : > { %p2814_p0 = scmp.ne.s32.totalorder %s361_s29, %s2813_s24  ;;  %p2822_p9 = scmp.lt.s32.totalorder %s2813_s24, %s2813_s24 }
  0xb9   : > { %p2816_p2 = pnand %p2814_p0, %p3194_p8  ;;  %p2823_p5 = por %p2822_p9, %p2821_p7 }
  0xbb   : > { %p2817_p4 = pneg %p2816_p2 }
  0xbd   : > { %p2824_p10 = pnand %p2823_p5, %p2817_p4 }
  0xbf   : > { %2827 = shalt.err (!%p2824_p10)
}
  0xc0   : > { %2536 = dma.hbm_to_vmem [thread:$0]  (!%p3178_p6), %s3751_s6, 256, %s361_s29, [#allocation12], %s3750_s11, %s3750_s11, %s3056_s30  }
  0xc1   : > { %s2828_s22 = scalar_lea.hbm %s3720_s8, 512 }
  0xc2   : > { %p2829_p1 = scmp.ne.s32.totalorder %s3720_s8, %s2828_s22  ;;  %p2835_p12 = scmp.lt.u32.totalorder %s2828_s22, %s3720_s8 }
  0xc4   : > { %p2831_p3 = pnand %p2829_p1, %p3194_p8 }
  0xc6   : > { %p2832_p11 = pneg %p2831_p3 }
  0xc8   : > { %p2837_p13 = pnand %p2835_p12, %p2832_p11 }
  0xca   : > { %2840 = shalt.err (!%p2837_p13)
}
  0xcb   : > { %s2841_s16 = scalar_lea.vmem %s385_s28, 512  ;;  %p2849_p7 = scmp.lt.s32.totalorder %s385_s28, %s385_s28 }
  0xcc   : > { %p2842_p0 = scmp.ne.s32.totalorder %s385_s28, %s2841_s16  ;;  %p2850_p9 = scmp.lt.s32.totalorder %s2841_s16, %s2841_s16 }
  0xce   : > { %p2844_p2 = pnand %p2842_p0, %p3194_p8  ;;  %p2851_p5 = por %p2850_p9, %p2849_p7 }
  0xd0   : > { %p2845_p4 = pneg %p2844_p2 }
  0xd2   : > { %p2852_p10 = pnand %p2851_p5, %p2845_p4 }
  0xd4   : > { %2855 = shalt.err (!%p2852_p10)
}
  0xd5   : > { %2542 = dma.hbm_to_vmem [thread:$0]  (!%p3178_p6), %s3720_s8, 512, %s385_s28, [#allocation15], %s3750_s11, %s3750_s11, %s3056_s30  }
  0xd6   : > { %s3061_s2 = smov [#allocation17]   ;;  %s2856_s22 = scalar_lea.hbm %s3721_s9, 16 }
  0xd7   : > { %s398_s20 = sshll.u32 %s3061_s2, 4  ;;  %p2857_p1 = scmp.ne.s32.totalorder %s3721_s9, %s2856_s22  ;;  %s399_s20 = int_to_ptr.vmem [resolvable:$true] %s398_s20 }
  0xd8   : > { %p2863_p12 = scmp.lt.u32.totalorder %s2856_s22, %s3721_s9 }
  0xd9   : > { %p2859_p3 = pnand %p2857_p1, %p3194_p8 }
  0xdb   : > { %p2860_p11 = pneg %p2859_p3 }
  0xdd   : > { %p2865_p13 = pnand %p2863_p12, %p2860_p11 }
  0xdf   : > { %2868 = shalt.err (!%p2865_p13)
}
  0xe0   : > { %s2869_s30 = scalar_lea.vmem %s399_s20, 16  ;;  %s2876_s11 = scalar_lea.vmem %s399_s20, 32 }
  0xe1   : > { %p2870_p0 = scmp.ne.s32.totalorder %s399_s20, %s2869_s30  ;;  %p2877_p7 = scmp.lt.s32.totalorder %s399_s20, %s399_s20 }
  0xe2   : > { %p2878_p9 = scmp.lt.s32.totalorder %s2876_s11, %s2869_s30 }
  0xe3   : > { %p2872_p2 = pnand %p2870_p0, %p3194_p8 }
  0xe4   : > { %p2879_p5 = por %p2878_p9, %p2877_p7 }
  0xe5   : > { %p2873_p4 = pneg %p2872_p2 }
  0xe7   : > { %p2880_p10 = pnand %p2879_p5, %p2873_p4 }
  0xe9   : > { %2883 = shalt.err (!%p2880_p10)
}
  0xea   : > { %2545 = dma.hbm_to_vmem [thread:$0]  (!%p3178_p6), %s3721_s9, 16, %s399_s20, [#allocation18]  }
  0xeb   : > { %s2298_s21 = sadd.s32 4294967294, %s3050_s18   ;;  %s45_s29 = sadd.s32 1, %s3046_s17 }
  0xec   : > { %p47_p8 = scmp.ge.s32.totalorder %s45_s29, 2  ;;  %s54_s23 = sadd.s32 1, %s3038_s15 }
  0xed   : > { %p61_p1 = scmp.ne.s32.totalorder %s3038_s15, %s3034_s14  ;;  %p62_p3 = scmp.eq.s32.totalorder %s3050_s18, 0 }
  0xee   : > { %s3783_s29 = smov (%p47_p8, %s45_s29), 0  ;;  %p67_p12 = scmp.ne.s32.totalorder %s3034_s14, %s3030_s13 }
  0xef   : > { %p3368_p11 = por %p62_p3, %p61_p1  ;;  %s49_s2 = ssub.s32 %s3046_s17, %s3783_s29 }
  0xf0   : > { %p287_p6 = scmp.eq.s32.totalorder %s3162_s19, 1  ;;  %p52_p13 = scmp.eq.s32.totalorder %s49_s2, 0 }
  0xf1   : > { %p3753_p0 = scmp.eq.s32.totalorder %s3162_s19, 0  ;;  %p293_p7 = scmp.eq.s32.totalorder %s2298_s21, 1 }
  0xf2   : > { %p3383_p4 = por %p287_p6, %p61_p1  ;;  %p2565_p5 = scmp.lt.s32.totalorder %s3050_s18, 2 }
  0xf3   : > { %p3379_p2 = por %p3753_p0, %p67_p12  ;;  %p3390_p9 = por %p293_p7, %p67_p12 }
  0xf4   : > { %s3755_s12 = scalar_select %p3383_p4, 1, 0 }
  0xf5   : > { %s3754_s20 = scalar_select %p3379_p2, 1, 0 }
  0xf6   : > { %s3388_s26 = scalar_select %p52_p13, %s3038_s15, %s54_s23  }
  0xf7   : > { %s3756_s22 = scalar_select %p3390_p9, 1, 0 }
  0xf8   : > { %s409_s10 = sand.u32 1, %s3038_s15   ;;  %s2310_s25 = sshll.u32 %s3046_s17, 7 }
  0xf9   : > { %s3397_s1 = sshll.u32 %s409_s10, 3  ;;  %s3402_s11 = scalar_lea.hbm %s3712_s0, %s2310_s25 }
  0xfa   : > { %s413_s28 = scalar_lea.vmem [#allocation2], %s3397_s1  ;;  %p3407_p10 = pnand %p2565_p5, %p3368_p11 }
  0xfb   : > { %s421_s16 = sshll.u32 %s413_s28, 4  ;;  %s3758_s27 = sld [smem:[#allocation30_spill]]  ;;  %s3411_s16 = int_to_ptr.vmem [resolvable:$true] %s421_s16 }
  0xfc   : > { %s410_s3 = scalar_lea.sflag [#allocation3], %s409_s10  ;;  %s2884_s4 = scalar_lea.hbm %s3402_s11, 128 }
  0xfd   : > { %p2885_p8 = scmp.ne.s32.totalorder %s3402_s11, %s2884_s4  ;;  %p2886_p1 = pneg %p3407_p10 }
  0xfe   : > { %s2889_s5 = scalar_lea.hbm %s3712_s0, 256  ;;  %p2890_p12 = scmp.lt.u32.totalorder %s3402_s11, %s3712_s0 }
  0xff   : > { %p2887_p3 = pnand %p2886_p1, %p2885_p8  ;;  %p2891_p6 = scmp.lt.u32.totalorder %s2889_s5, %s2884_s4 }
 0x100   : > { %p2893_p0 = scmp.lt.u32.totalorder %s2884_s4, %s3402_s11 }
 0x101   : > { %s3416_s30 = scalar_lea.hbm %s3758_s27, %s2310_s25  ;;  %p2888_p11 = pneg %p2887_p3 }
 0x102   : > { %p2892_p13 = por %p2891_p6, %p2890_p12 }
 0x104   : > { %p2894_p7 = por %p2893_p0, %p2892_p13 }
 0x106   : > { %p2895_p5 = pnand %p2894_p7, %p2888_p11 }
 0x108   : > { %2898 = shalt.err (!%p2895_p5)
}
 0x109   : > { %s2899_s10 = scalar_lea.vmem %s3411_s16, 128  ;;  %s3062_s25 = smov [#allocation2]  }
 0x10a   : > { %p2900_p8 = scmp.ne.s32.totalorder %s3411_s16, %s2899_s10  ;;  %s2904_s23 = sshll.u32 %s3062_s25, 4  ;;  %s2905_s23 = int_to_ptr.vmem [resolvable:$false] %s2904_s23 }
 0x10b   : > { %s2906_s6 = scalar_lea.vmem %s2905_s23, 256  ;;  %p2907_p4 = scmp.lt.s32.totalorder %s3411_s16, %s2905_s23 }
 0x10c   : > { %p2902_p3 = pnand %p2900_p8, %p2886_p1  ;;  %p2908_p12 = scmp.lt.s32.totalorder %s2906_s6, %s2899_s10 }
 0x10e   : > { %p2903_p9 = pneg %p2902_p3  ;;  %p2909_p6 = por %p2908_p12, %p2907_p4 }
 0x110   : > { %p2910_p13 = pnand %p2909_p6, %p2903_p9 }
 0x112   : > { %2913 = shalt.err (!%p2910_p13)
}
 0x113   : > { %2549 = dma.hbm_to_vmem [thread:$0]  (!%p3407_p10), %s3402_s11, 128, %s3411_s16, %s410_s3  }
 0x114   : > { %s428_s4 = sand.u32 1, %s3050_s18   ;;  %s432_s5 = scalar_lea.vmem [#allocation5], %s3397_s1 }
 0x115   : > { %s439_s7 = sshll.u32 %s432_s5, 4  ;;  %s429_s2 = scalar_lea.sflag [#allocation6], %s428_s4  ;;  %s440_s7 = int_to_ptr.vmem [resolvable:$true] %s439_s7 }
 0x116   : > { %s2914_s24 = scalar_lea.hbm %s3416_s30, 128  ;;  %s2919_s25 = scalar_lea.hbm %s3758_s27, 256 }
 0x117   : > { %p2915_p4 = scmp.ne.s32.totalorder %s3416_s30, %s2914_s24  ;;  %p2920_p0 = scmp.lt.u32.totalorder %s3416_s30, %s3758_s27 }
 0x118   : > { %p2921_p7 = scmp.lt.u32.totalorder %s2919_s25, %s2914_s24  ;;  %p2923_p8 = scmp.lt.u32.totalorder %s2914_s24, %s3416_s30 }
 0x119   : > { %p2917_p9 = pnand %p2915_p4, %p2886_p1 }
 0x11a   : > { %p2922_p5 = por %p2921_p7, %p2920_p0 }
 0x11b   : > { %p2918_p11 = pneg %p2917_p9 }
 0x11c   : > { %p2924_p3 = por %p2923_p8, %p2922_p5 }
 0x11e   : > { %p2925_p12 = pnand %p2924_p3, %p2918_p11 }
 0x120   : > { %2928 = shalt.err (!%p2925_p12)
}
 0x121   : > { %s2929_s3 = scalar_lea.vmem %s440_s7, 128  ;;  %s3063_s1 = smov [#allocation5]  }
 0x122   : > { %p2930_p6 = scmp.ne.s32.totalorder %s440_s7, %s2929_s3  ;;  %s2934_s11 = sshll.u32 %s3063_s1, 4  ;;  %s2935_s11 = int_to_ptr.vmem [resolvable:$false] %s2934_s11 }
 0x123   : > { %s2936_s16 = scalar_lea.vmem %s2935_s11, 256  ;;  %p2937_p9 = scmp.lt.s32.totalorder %s440_s7, %s2935_s11 }
 0x124   : > { %p2932_p13 = pnand %p2930_p6, %p2886_p1  ;;  %p2938_p2 = scmp.lt.s32.totalorder %s2936_s16, %s2929_s3 }
 0x126   : > { %p2933_p4 = pneg %p2932_p13  ;;  %p2939_p0 = por %p2938_p2, %p2937_p9 }
 0x128   : > { %p2940_p7 = pnand %p2939_p0, %p2933_p4 }
 0x12a   : > { %2943 = shalt.err (!%p2940_p7)
}
 0x12b   : > { %2552 = dma.hbm_to_vmem [thread:$0]  (!%p3407_p10), %s3416_s30, 128, %s440_s7, %s429_s2  }
 0x12c   : > { %s3759_s4 = sld [smem:[#allocation29_spill]] }
 0x132   : > { %p3760_p11 = scmp.ne.s32.totalorder %s3759_s4, 0 }
 0x133   : > { %s3467_s5 = sand.u32 (!%p3760_p11), 1, %s3034_s14   ;;  %p3761_p2 = scmp.ne.s32.totalorder (!%p3760_p11), %s3754_s20, 0 }
 0x134   : > { %448 = sbr.rel (%p3760_p11) target bundleno = 1825 (0x721), region = 60  ;;  %s3470_s24 = sshll.u32 (!%p3760_p11), %s3467_s5, 3 }
 0x135   : > { %s451_s28 = scalar_lea.sflag (!%p3760_p11), [#allocation3], %s3467_s5  ;;  %s454_s10 = scalar_lea.vmem (!%p3760_p11), [#allocation2], %s3470_s24 }
 0x13b   : > { %2997 = dma.done.wait (%p3761_p2), %s451_s28, 128  }
 0x13c   : > { %2999 = vsyncadd (%p3761_p2), %s451_s28, 4294967168  ;;  %s459_s21 = sand.u32 1, %s3162_s19   ;;  %s463_s7 = scalar_lea.vmem [#allocation5], %s3470_s24 }
 0x13d   : > { %s460_s30 = scalar_lea.sflag [#allocation6], %s459_s21 }
 0x13e   : > { %3001 = dma.done.wait (%p3761_p2), %s460_s30, 128  }
 0x13f   : > { %3003 = vsyncadd (%p3761_p2), %s460_s30, 4294967168  ;;  %p3762_p10 = scmp.eq.s32.totalorder %s3162_s19, 0 }
 0x141   : > { %3005 = dma.done.wait (%p3762_p10), [#allocation6], 512   ;;  %p3763_p1 = pmov %p3762_p10 }
 0x143   : > { %3007 = vsyncadd (%p3763_p1), [#allocation6], 4294966784  ;;  %p3764_p5 = pmov %p3763_p1 }
 0x144   : > { %p3765_p8 = pmov %p3763_p1 }
 0x145   : > { %3009 = dma.done.wait (%p3764_p5), [#allocation9], 272  }
 0x146   : > { %3011 = vsyncadd (%p3765_p8), [#allocation9], 4294967024  ;;  %p3766_p3 = pmov %p3763_p1 }
 0x147   : > { %p3767_p12 = pmov %p3763_p1 }
 0x148   : > { %3013 = dma.done.wait (%p3766_p3), [#allocation12], 272  }
 0x149   : > { %3015 = vsyncadd (%p3767_p12), [#allocation12], 4294967024  ;;  %p3768_p6 = pmov %p3763_p1 }
 0x14a   : > { %p3769_p13 = pmov %p3763_p1 }
 0x14b   : > { %3017 = dma.done.wait (%p3768_p6), [#allocation15], 528  }
 0x14c   : > { %3019 = vsyncadd (%p3769_p13), [#allocation15], 4294966768  ;;  %p3770_p4 = pmov %p3763_p1 }
 0x14d   : > { %p3771_p9 = pmov %p3763_p1 }
 0x14e   : > { %3021 = dma.done.wait (%p3770_p4), [#allocation18], 16  }
 0x14f   : > { %3023 = vsyncadd (%p3771_p9), [#allocation18], 4294967280  ;;  %v3064_v0 = vmov 0.0|0.0   ;;  %vm3065_vm0 = vmmov 0   ;;  %v3066_v1 = vmov 0.0   ;;  %v539_v2 = vld [vmem:[#allocation7] sm:$0xff]  ;;  %v802_v27 = vlaneseq }
 0x150   : > { %2465 = vmatprep.subr.bf16.mxu0 %v3064_v0  ;;  %2471 = vmatprep.subr.bf16.mxu1 %v3064_v0  ;;  %v540_v3 = vld [vmem:[#allocation7 + $0x8] sm:$0xff]  ;;  %v541_v7 = vld [vmem:[#allocation7 + $0x10] sm:$0xff]  ;;  %v542_v9 = vld [vmem:[#allocation7 + $0x18] sm:$0xff]  ;;  %vm633_vm1 = vcmask 130048   ;;  %vm550_vm2 = vcmask 261120   ;;  %s3067_s19 = smov 120  }
 0x151   : > { %2404 = vmatprep.mubr.msk.f32.mxu1 %vm3065_vm0, %v3066_v1  ;;  %2397 = vmatprep.mubr.msk.f32.mxu0 %vm3065_vm0, %v3066_v1  ;;  %v624_v4 = vld [vmem:[#allocation10] sm:$0xff]  ;;  %v2466_v5 = vpack.c.bf16 %v540_v3, %v539_v2  ;;  %v625_v6 = vld [vmem:[#allocation10 + $0x8] sm:$0xff]  ;;  %v2469_v10 = vpack.c.bf16 %v542_v9, %v541_v7  ;;  %v2327_v13 = vld [vmem:[#allocation11] ss:$0 sm:$0xff]  ;;  %s3068_s20 = smov 104   ;;  %s3069_s2 = smov 112  }
 0x152   : > { %v2472_v8 = vpack.c.bf16 %v625_v6, %v624_v4  ;;  %v538_v11 = vld [vmem:[%s463_s7] sm:$0xff]  ;;  %v537_v12 = vld [vmem:[%s454_s10] sm:$0xff]  ;;  %v3070_v25 = vmov 1983009808   ;;  %v3071_v28 = vmov 1934713408  }
 0x153   : > { %2467 = vmatpush3.bf16.msra.mxu0 %v2466_v5  ;;  %v2325_v17 = vld [vmem:[#allocation8] ss:$0 sm:$0xff]  ;;  %v707_v18 = vld [vmem:[#allocation13] sm:$0xff]  ;;  %v800_v26 = vunpack.c.l.s4 %v3070_v25  ;;  %v832_v29 = vunpack.c.l.s4 %v3071_v28  ;;  %v803_v31 = vshrl.u32 %v802_v27, 7  ;;  %vm1225_vm3 = vcmask 64512   ;;  %s3772_s25 = sld [smem:[#allocation28_spill]] }
 0x154   : > { %2473 = vmatpush3.bf16.msra.mxu1 %v2472_v8  ;;  %2468 = vmatprep.subr.bf16.mxu0 %v3064_v0  ;;  %v708_v19 = vld [vmem:[#allocation13 + $0x8] sm:$0xff]  ;;  %s3072_s23 = smov 16   ;;  %s3073_s6 = smov 8   ;;  %vm2016_vm4 = vcmask 195584  }
 0x155   : > { %2474 = vmatprep.subr.bf16.mxu1 %v3064_v0  ;;  %v2475_v20 = vpack.c.bf16 %v708_v19, %v707_v18  ;;  %v801_v30 = vunpack.c.0.s8 %v800_v26  ;;  %v833_v34 = vunpack.c.0.s8 %v832_v29  ;;  %s3074_s3 = smov 24   ;;  %s536_s11 = scalar_lea.vmem [#allocation19], %s3470_s24 }
 0x156   : > { %s2118_s16 = sshll.u32 %s536_s11, 4  ;;  %s3773_s10 = sld [smem:[#allocation37_spill]]  ;;  %s3664_s16 = int_to_ptr.vmem [resolvable:$true] %s2118_s16 }
 0x157   : > { %2405 = vmatmul.mubr.msk.f32.vlgmr.msra.gmra.mrb[0].mxu1 %vm633_vm1, %v538_v11  ;;  %2470 = vmatpush3.bf16.msra.mxu0 %v2469_v10  ;;  %v3533_v35 = vsub.s32 %v801_v30, %v803_v31  ;;  %v3535_v42 = vsub.s32 %v833_v34, %v803_v31  ;;  %s2104_s30 = scalar_lea.sflag [#allocation4], %s3467_s5  ;;  %s2944_s7 = scalar_lea.vmem %s3664_s16, 128 }
 0x158   : > { %2411 = vmatprep.mubr.msk.f32.mxu1 %vm3065_vm0, %v3066_v1  ;;  %2424 = vmatprep.subr.mxu0 %v3066_v1  ;;  %p2945_p0 = scmp.ne.s32.totalorder %s3664_s16, %s2944_s7  ;;  %p3774_p7 = scmp.ne.s32.totalorder %s3755_s12, 0 }
 0x159   : > { %2476 = vmatpush3.bf16.msra.mxu1 %v2475_v20  ;;  %s2354_s1 = sshll.u32 %s3772_s25, 7  ;;  %s3075_s24 = smov [#allocation19]  }
 0x15a   : > { %2398 = vmatmul.mubr.msk.f32.vlgmr.msra.gmra.mrb[0].mxu0 %vm550_vm2, %v537_v12  ;;  %2414 = vmatprep.subr.mxu1 %v3066_v1  ;;  %p2946_p11 = pnand %p2945_p0, %p3774_p7 }
 0x15b   : > { %2426 = vmatprep.mubr.msk.f32.mxu0 %vm3065_vm0, %v3066_v1 }
 0x15c   : > { %2412 = vmatmul.mubr.msk.f32.vlgmr.msra.gmra.mrb[2].mxu1 %vm633_vm1, %v538_v11  ;;  %s3662_s21 = scalar_lea.hbm %s3773_s10, %s2354_s1  ;;  %p2947_p2 = pneg %p2946_p11 }
 0x15d   : > { %2416 = vmatprep.mubr.msk.f32.mxu1 %vm3065_vm0, %v3066_v1 }
 0x22a   : > { %v703_v14 = vpop.f32.mrb[0].mxu1 }
 0x22b   : > { %v704_v15 = vadd.f32 %v2327_v13, %v703_v14  ;;  %v2406_v16 = vpop.f32.mrb[1].mxu1 }
 0x22d   : > { %934 = vrot.lane.b32.xlu0 %v704_v15, %s3067_s19  ;;  %v620_v21 = vpop.f32.mrb[0].mxu0  ;;  %940 = vrot.lane.b32.xlu1 %v704_v15, %s3068_s20 }
 0x22e   : > { %v621_v22 = vadd.f32 %v2325_v17, %v620_v21  ;;  %v2399_v23 = vpop.f32.mrb[1].mxu0 }
 0x230   : > { %v786_v24 = vmul.f32 0.35355338, %v621_v22 }
 0x231   : > { %937 = vrot.lane.b32.xlu0 %v704_v15, %s3069_s2 }
 0x232   : > { %788 = vrot.lane.b32.xlu1 %v786_v24, %s3067_s19 }
 0x235   : > { %791 = vrot.lane.b32.xlu0 %v786_v24, %s3069_s2 }
 0x236   : > { %794 = vrot.lane.b32.xlu1 %v786_v24, %s3068_s20 }
 0x29f   : > { %v935_v32 = vpop.permute.xlu0 %934  ;;  %v941_v33 = vpop.permute.xlu1 %940 }
 0x2a0   : > { %v959_v36 = vcombine.low %v935_v32, %v941_v33  ;;  %v960_v37 = vcombine.high %v935_v32, %v941_v33 }
 0x2a2   : > { %v967_v43 = vrot.slane %v959_v36, %v3533_v35  ;;  %v974_v44 = vrot.slane %v960_v37, %v3533_v35 }
 0x2a3   : > { %v938_v38 = vpop.permute.xlu0 %937 }
 0x2a4   : > { %v943_v39 = vcombine.low %v704_v15, %v938_v38  ;;  %v944_v40 = vcombine.high %v704_v15, %v938_v38  ;;  %v789_v41 = vpop.permute.xlu1 %788 }
 0x2a6   : > { %v951_v45 = vrot.slane %v943_v39, %v3533_v35  ;;  %v958_v46 = vrot.slane %v944_v40, %v3533_v35 }
 0x2a7   : > { %v792_v47 = vpop.permute.xlu0 %791 }
 0x2a8   : > { %v975_v48 = vcombine.low %v951_v45, %v967_v43  ;;  %v976_v49 = vcombine.high %v951_v45, %v967_v43  ;;  %v991_v50 = vcombine.low %v958_v46, %v974_v44  ;;  %v992_v51 = vcombine.high %v958_v46, %v974_v44  ;;  %v795_v52 = vpop.permute.xlu1 %794 }
 0x2a9   : > { %v797_v53 = vcombine.low %v786_v24, %v792_v47  ;;  %v798_v54 = vcombine.high %v786_v24, %v792_v47  ;;  %v813_v55 = vcombine.low %v789_v41, %v795_v52  ;;  %v814_v56 = vcombine.high %v789_v41, %v795_v52 }
 0x2aa   : > { %v983_v57 = vrot.slane %v975_v48, %v3535_v42  ;;  %v990_v58 = vrot.slane %v976_v49, %v3535_v42  ;;  %v999_v59 = vrot.slane %v991_v50, %v3535_v42  ;;  %v1006_v60 = vrot.slane %v992_v51, %v3535_v42 }
 0x2ab   : > { %v805_v61 = vrot.slane %v797_v53, %v3533_v35  ;;  %v812_v62 = vrot.slane %v798_v54, %v3533_v35  ;;  %v821_v63 = vrot.slane %v813_v55, %v3533_v35  ;;  %v828_v2 = vrot.slane %v814_v56, %v3533_v35  ;;  %v782_v53 = vpop.f32.mrb[2].mxu1 }
 0x2ac   : > { %v1011_v3 = vcombine.low %v983_v57, %v990_v58  ;;  %v2333_v4 = vcombine.high %v983_v57, %v990_v58  ;;  %v1027_v5 = vcombine.low %v999_v59, %v1006_v60  ;;  %v2334_v6 = vcombine.high %v999_v59, %v1006_v60  ;;  %v2413_v54 = vpop.f32.mrb[3].mxu1 }
 0x2ad   : > { %v829_v7 = vcombine.low %v805_v61, %v821_v63  ;;  %v830_v8 = vcombine.high %v805_v61, %v821_v63  ;;  %v845_v9 = vcombine.low %v812_v62, %v828_v2  ;;  %v846_v10 = vcombine.high %v812_v62, %v828_v2 }
 0x2ae   : > { %v1018_v11 = vrot.slane %v1011_v3, %v3533_v35  ;;  %v1026_v12 = vrot.slane %v2333_v4, %v3533_v35  ;;  %v1034_v13 = vrot.slane %v1027_v5, %v3533_v35  ;;  %v1042_v14 = vrot.slane %v2334_v6, %v3533_v35  ;;  %v2329_v5 = vld [vmem:[#allocation14] ss:$0 sm:$0xff] }
 0x2af   : > { %v837_v15 = vrot.slane %v829_v7, %v3535_v42  ;;  %v844_v16 = vrot.slane %v830_v8, %v3535_v42  ;;  %v853_v17 = vrot.slane %v845_v9, %v3535_v42  ;;  %v860_v18 = vrot.slane %v846_v10, %v3535_v42 }
 0x2b0   : > { %v1043_v19 = vcombine.low %v1018_v11, %v1026_v12  ;;  %v1044_v20 = vcombine.high %v1018_v11, %v1026_v12  ;;  %v1059_v21 = vcombine.low %v1034_v13, %v1042_v14  ;;  %v1060_v22 = vcombine.high %v1034_v13, %v1042_v14 }
 0x2b1   : > { %v865_v23 = vcombine.low %v837_v15, %v844_v16  ;;  %v2331_v24 = vcombine.high %v837_v15, %v844_v16  ;;  %v881_v25 = vcombine.low %v853_v17, %v860_v18  ;;  %v2332_v26 = vcombine.high %v853_v17, %v860_v18 }
 0x2b2   : > { %v1051_v27 = vrot.slane %v1043_v19, %v3535_v42  ;;  %v1067_v28 = vrot.slane %v1059_v21, %v3535_v42  ;;  %v1058_v29 = vrot.slane %v1044_v20, %v3535_v42  ;;  %v1074_v30 = vrot.slane %v1060_v22, %v3535_v42 }
 0x2b3   : > { %v872_v31 = vrot.slane %v865_v23, %v3533_v35  ;;  %v880_v32 = vrot.slane %v2331_v24, %v3533_v35  ;;  %v888_v33 = vrot.slane %v881_v25, %v3533_v35  ;;  %v896_v34 = vrot.slane %v2332_v26, %v3533_v35 }
 0x2b4   : > { %v1075_v36 = vcombine.low %v1051_v27, %v1067_v28  ;;  %v1077_v37 = vcombine.low %v1058_v29, %v1074_v30  ;;  %v1076_v49 = vcombine.high %v1051_v27, %v1067_v28  ;;  %v1078_v51 = vcombine.high %v1058_v29, %v1074_v30 }
 0x2b5   : > { %v897_v38 = vcombine.low %v872_v31, %v880_v32  ;;  %v898_v39 = vcombine.high %v872_v31, %v880_v32  ;;  %v913_v40 = vcombine.low %v888_v33, %v896_v34  ;;  %v914_v41 = vcombine.high %v888_v33, %v896_v34 }
 0x2b6   : > { %2415 = vmatpush3.xpose.msk.msra.mxu1 %vm1225_vm3, %v1075_v36  ;;  %2425 = vmatpush3.xpose.msk.msra.mxu0 %vm1225_vm3, %v1077_v37  ;;  %v783_v6 = vadd.f32 %v2329_v5, %v782_v53 }
 0x2b7   : > { %2419 = vmatprep.subr.mxu1 %v3066_v1  ;;  %v905_v43 = vrot.slane %v897_v38, %v3535_v42  ;;  %v921_v44 = vrot.slane %v913_v40, %v3535_v42  ;;  %v912_v45 = vrot.slane %v898_v39, %v3535_v42  ;;  %v928_v46 = vrot.slane %v914_v41, %v3535_v42 }
 0x2b8   : > { %2434 = vmatprep.subr.mxu0 %v3066_v1 }
 0x2b9   : > { %v929_v47 = vcombine.low %v905_v43, %v921_v44  ;;  %v931_v48 = vcombine.low %v912_v45, %v928_v46  ;;  %v930_v50 = vcombine.high %v905_v43, %v921_v44  ;;  %v932_v52 = vcombine.high %v912_v45, %v928_v46 }
 0x2bb   : > { %2417 = vmatmul.mubr.msk.f32.vlgmr.msra.gmra.mrb[4].mxu1 %vm1225_vm3, %v929_v47  ;;  %2427 = vmatmul.mubr.msk.f32.vlgmr.msra.gmra.mrb[2].mxu0 %vm1225_vm3, %v931_v48 }
 0x2bc   : > { %2420 = vmatpush3.xpose.msk.msra.mxu1 %vm1225_vm3, %v1076_v49  ;;  %2421 = vmatprep.mubr.msk.f32.mxu1 %vm3065_vm0, %v3066_v1 }
 0x2bd   : > { %2429 = vmatprep.subr.mxu1 %v3066_v1  ;;  %2436 = vmatprep.mubr.msk.f32.mxu0 %vm3065_vm0, %v3066_v1 }
 0x2bf   : > { %2422 = vmatmul.mubr.msk.f32.vlgmr.msra.gmra.mrb[6].mxu1 %vm1225_vm3, %v930_v50 }
 0x2c0   : > { %2430 = vmatpush3.xpose.msk.msra.mxu1 %vm1225_vm3, %v1078_v51  ;;  %2431 = vmatprep.mubr.msk.f32.mxu1 %vm3065_vm0, %v3066_v1 }
 0x2c1   : > { %2439 = vmatprep.subr.mxu1 %v3066_v1 }
 0x2c3   : > { %2432 = vmatmul.mubr.msk.f32.vlgmr.msra.gmra.mrb[8].mxu1 %vm1225_vm3, %v932_v52 }
 0x2c4   : > { %2441 = vmatprep.mubr.msk.f32.mxu1 %vm3065_vm0, %v3066_v1 }
 0x38e   : > { %v1298_v55 = vpop.f32.mrb[4].mxu1  ;;  %v1450_v56 = vpop.f32.mrb[2].mxu0 }
 0x38f   : > { %v2418_v57 = vpop.f32.mrb[5].mxu1  ;;  %v2428_v58 = vpop.f32.mrb[3].mxu0  ;;  %v1530_v59 = vsel %vm1225_vm3, %v1298_v55, -inf  ;;  %v1536_v63 = vsel %vm1225_vm3, %v1450_v56, -inf }
 0x390   : > { %1531 = vmax.xlane.f32.xlu0 %v1530_v59 }
 0x392   : > { %v1374_v60 = vpop.f32.mrb[6].mxu1 }
 0x393   : > { %v2423_v61 = vpop.f32.mrb[7].mxu1  ;;  %v1533_v62 = vsel %vm1225_vm3, %v1374_v60, -inf }
 0x394   : > { %1534 = vmax.xlane.f32.xlu1 %v1533_v62  ;;  %1537 = vmax.xlane.f32.xlu0 %v1536_v63 }
 0x396   : > { %v1526_v2 = vpop.f32.mrb[8].mxu1 }
 0x397   : > { %v2433_v3 = vpop.f32.mrb[9].mxu1  ;;  %v1539_v4 = vsel %vm1225_vm3, %v1526_v2, -inf }
 0x398   : > { %1540 = vmax.xlane.f32.xlu0 %v1539_v4 }
 0x3a5   : > { %1080 = vrot.lane.b32.xlu1 %v783_v6, %s3067_s19  ;;  %s2948_s19 = sshll.u32 %s3075_s24, 4  ;;  %s2949_s19 = int_to_ptr.vmem [resolvable:$false] %s2948_s19 }
 0x3a6   : > { %p2951_p10 = scmp.lt.s32.totalorder %s3664_s16, %s2949_s19 }
 0x41d   : > { %v1532_v7 = vpop.xlane.xlu0 %1531 }
 0x41e   : > { %v1542_v8 = vsub.f32 %v1298_v55, %v1532_v7 }
 0x420   : > { %v1546_v9 = vmul.f32 1.442695, %v1542_v8 }
 0x421   : > { %v1535_v10 = vpop.xlane.xlu1 %1534  ;;  %v1538_v11 = vpop.xlane.xlu0 %1537 }
 0x422   : > { %2644 = vpow2.f32 %v1546_v9  ;;  %v1543_v12 = vsub.f32 %v1374_v60, %v1535_v10  ;;  %v1544_v13 = vsub.f32 %v1450_v56, %v1538_v11 }
 0x424   : > { %v1548_v14 = vmul.f32 1.442695, %v1543_v12  ;;  %v1550_v15 = vmul.f32 1.442695, %v1544_v13 }
 0x425   : > { %v1541_v16 = vpop.xlane.xlu0 %1540  ;;  %v1081_v27 = vpop.permute.xlu1 %1080 }
 0x426   : > { %2646 = vpow2.f32 %v1548_v14  ;;  %v1545_v17 = vsub.f32 %v1526_v2, %v1541_v16 }
 0x427   : > { %2648 = vpow2.f32 %v1550_v15 }
 0x428   : > { %v1552_v18 = vmul.f32 1.442695, %v1545_v17 }
 0x42a   : > { %2650 = vpow2.f32 %v1552_v18  ;;  %v2018_v18 = vld [vmem:[#allocation16] sm:$0xff] }
 0x42c   : > { %v2645_v19 = vpop.eup %2644 }
 0x42d   : > { %v1554_v20 = vsel %vm1225_vm3, %v2645_v19, 0.0 }
 0x42e   : > { %1555 = vadd.xlane.f32.xlu1 %v1554_v20 }
 0x430   : > { %v2647_v21 = vpop.eup %2646 }
 0x431   : > { %v3595_v22 = vpop.eup %2648  ;;  %v1557_v23 = vsel %vm1225_vm3, %v2647_v21, 0.0 }
 0x432   : > { %1558 = vadd.xlane.f32.xlu0 %v1557_v23  ;;  %v1560_v24 = vsel %vm1225_vm3, %v3595_v22, 0.0 }
 0x433   : > { %1561 = vadd.xlane.f32.xlu1 %v1560_v24 }
 0x434   : > { %v3600_v25 = vpop.eup %2650 }
 0x435   : > { %v1563_v26 = vsel %vm1225_vm3, %v3600_v25, 0.0 }
 0x436   : > { %1564 = vadd.xlane.f32.xlu0 %v1563_v26 }
 0x444   : > { %1086 = vrot.lane.b32.xlu1 %v783_v6, %s3068_s20  ;;  %s2950_s20 = scalar_lea.vmem %s2949_s19, 256 }
 0x445   : > { %p2952_p1 = scmp.lt.s32.totalorder %s2950_s20, %s2944_s7 }
 0x447   : > { %p2953_p5 = por %p2952_p1, %p2951_p10 }
 0x449   : > { %p2954_p8 = pnand %p2953_p5, %p2947_p2 }
 0x44c   : > { %1083 = vrot.lane.b32.xlu0 %v783_v6, %s3069_s2 }
 0x4bb   : > { %v1556_v28 = vpop.xlane.xlu1 %1555 }
 0x4bc   : > { %2652 = vrcp.f32 %v1556_v28 }
 0x4bf   : > { %v1559_v29 = vpop.xlane.xlu0 %1558 }
 0x4c0   : > { %v1562_v30 = vpop.xlane.xlu1 %1561  ;;  %2654 = vrcp.f32 %v1559_v29 }
 0x4c1   : > { %2656 = vrcp.f32 %v1562_v30 }
 0x4c3   : > { %v1565_v31 = vpop.xlane.xlu0 %1564 }
 0x4c4   : > { %v1087_v32 = vpop.permute.xlu1 %1086  ;;  %2658 = vrcp.f32 %v1565_v31 }
 0x4c5   : > { %v1105_v33 = vcombine.low %v1081_v27, %v1087_v32  ;;  %v1106_v34 = vcombine.high %v1081_v27, %v1087_v32 }
 0x4c6   : > { %v2653_v2 = vpop.eup %2652 }
 0x4c7   : > { %v1084_v36 = vpop.permute.xlu0 %1083  ;;  %v1113_v39 = vrot.slane %v1105_v33, %v3533_v35  ;;  %v1120_v40 = vrot.slane %v1106_v34, %v3533_v35  ;;  %v1570_v11 = vmul.f32 %v2653_v2, %v2645_v19  ;;  %v2019_v19 = vld [vmem:[#allocation16 + $0x8] sm:$0xff] }
 0x4c8   : > { %v1089_v37 = vcombine.low %v783_v6, %v1084_v36  ;;  %v1090_v38 = vcombine.high %v783_v6, %v1084_v36  ;;  %v2478_v20 = vpack.c.bf16 %v2019_v19, %v2018_v18 }
 0x4ca   : > { %v1097_v41 = vrot.slane %v1089_v37, %v3533_v35  ;;  %v1104_v43 = vrot.slane %v1090_v38, %v3533_v35  ;;  %v2655_v4 = vpop.eup %2654 }
 0x4cb   : > { %v2657_v10 = vpop.eup %2656  ;;  %v1571_v12 = vmul.f32 %v2655_v4, %v2647_v21 }
 0x4cc   : > { %v1121_v44 = vcombine.low %v1097_v41, %v1113_v39  ;;  %v1122_v45 = vcombine.high %v1097_v41, %v1113_v39  ;;  %v1137_v46 = vcombine.low %v1104_v43, %v1120_v40  ;;  %v1138_v47 = vcombine.high %v1104_v43, %v1120_v40  ;;  %v2020_v40 = vld [vmem:[#allocation16 + $0x10] sm:$0xff]  ;;  %v2021_v41 = vld [vmem:[#allocation16 + $0x18] sm:$0xff] }
 0x4cd   : > { %v1572_v16 = vmul.f32 %v2657_v10, %v3595_v22  ;;  %v2351_v10 = vld [vmem:[#allocation17] ss:$0 sm:$0xff] }
 0x4ce   : > { %v1129_v48 = vrot.slane %v1121_v44, %v3535_v42  ;;  %v1136_v49 = vrot.slane %v1122_v45, %v3535_v42  ;;  %v1145_v50 = vrot.slane %v1137_v46, %v3535_v42  ;;  %v1152_v51 = vrot.slane %v1138_v47, %v3535_v42  ;;  %v2659_v13 = vpop.eup %2658 }
 0x4cf   : > { %v1573_v17 = vmul.f32 %v2659_v13, %v3600_v25  ;;  %v2481_v47 = vpack.c.bf16 %v2021_v41, %v2020_v40 }
 0x4d0   : > { %v1157_v52 = vcombine.low %v1129_v48, %v1136_v49  ;;  %v2335_v53 = vcombine.high %v1129_v48, %v1136_v49  ;;  %v1173_v54 = vcombine.low %v1145_v50, %v1152_v51  ;;  %v2336_v55 = vcombine.high %v1145_v50, %v1152_v51 }
 0x4d2   : > { %v1164_v56 = vrot.slane %v1157_v52, %v3533_v35  ;;  %v1172_v57 = vrot.slane %v2335_v53, %v3533_v35  ;;  %v1180_v58 = vrot.slane %v1173_v54, %v3533_v35  ;;  %v1188_v59 = vrot.slane %v2336_v55, %v3533_v35 }
 0x4d4   : > { %v1189_v60 = vcombine.low %v1164_v56, %v1172_v57  ;;  %v1190_v61 = vcombine.high %v1164_v56, %v1172_v57  ;;  %v1205_v62 = vcombine.low %v1180_v58, %v1188_v59  ;;  %v1206_v63 = vcombine.high %v1180_v58, %v1188_v59 }
 0x4d6   : > { %v1197_v3 = vrot.slane %v1189_v60, %v3535_v42  ;;  %v1213_v5 = vrot.slane %v1205_v62, %v3535_v42  ;;  %v1204_v6 = vrot.slane %v1190_v61, %v3535_v42  ;;  %v1220_v7 = vrot.slane %v1206_v63, %v3535_v42 }
 0x4d8   : > { %v1221_v8 = vcombine.low %v1197_v3, %v1213_v5  ;;  %v1222_v9 = vcombine.high %v1197_v3, %v1213_v5  ;;  %v1223_v14 = vcombine.low %v1204_v6, %v1220_v7  ;;  %v1224_v15 = vcombine.high %v1204_v6, %v1220_v7 }
 0x4da   : > { %2435 = vmatpush3.msra.mxu0 %v1221_v8  ;;  %2440 = vmatpush3.msra.mxu1 %v1222_v9 }
 0x4db   : > { %2437 = vmatmul.mubr.msk.f32.vlgmr.msra.gmra.mrb[4].mxu0 %vm1225_vm3, %v1570_v11  ;;  %2442 = vmatmul.mubr.msk.f32.vlgmr.msra.gmra.mrb[10].mxu1 %vm1225_vm3, %v1571_v12 }
 0x4dc   : > { %2444 = vmatprep.subr.mxu0 %v3066_v1  ;;  %2449 = vmatprep.subr.mxu1 %v3066_v1 }
 0x4dd   : > { %2445 = vmatpush3.msra.mxu0 %v1223_v14  ;;  %2450 = vmatpush3.msra.mxu1 %v1224_v15 }
 0x4de   : > { %2446 = vmatprep.mubr.msk.f32.mxu0 %vm3065_vm0, %v3066_v1  ;;  %2451 = vmatprep.mubr.msk.f32.mxu1 %vm3065_vm0, %v3066_v1 }
 0x4df   : > { %2447 = vmatmul.mubr.msk.f32.vlgmr.msra.gmra.mrb[6].mxu0 %vm1225_vm3, %v1572_v16  ;;  %2452 = vmatmul.mubr.msk.f32.vlgmr.msra.gmra.mrb[12].mxu1 %vm1225_vm3, %v1573_v17 }
 0x4e0   : > { %2477 = vmatprep.subr.bf16.mxu0 %v3064_v0  ;;  %2462 = vmatprep.mubr.msk.f32.mxu0 %vm3065_vm0, %v3066_v1 }
 0x4e1   : > { %2479 = vmatpush3.bf16.msra.mxu0 %v2478_v20 }
 0x4e2   : > { %2480 = vmatprep.subr.bf16.mxu0 %v3064_v0 }
 0x4e5   : > { %2482 = vmatpush3.bf16.msra.mxu0 %v2481_v47 }
 0x5ae   : > { %v1643_v21 = vpop.f32.mrb[4].mxu0  ;;  %v1716_v22 = vpop.f32.mrb[10].mxu1 }
 0x5af   : > { %v2438_v23 = vpop.f32.mrb[5].mxu0  ;;  %v2443_v24 = vpop.f32.mrb[11].mxu1 }
 0x5b2   : > { %v1789_v25 = vpop.f32.mrb[6].mxu0  ;;  %v1862_v26 = vpop.f32.mrb[12].mxu1 }
 0x5b3   : > { %v1866_v27 = vcombine.low %v1643_v21, %v1789_v25  ;;  %v1867_v28 = vcombine.high %v1643_v21, %v1789_v25  ;;  %v1882_v29 = vcombine.low %v1716_v22, %v1862_v26  ;;  %v1883_v30 = vcombine.high %v1716_v22, %v1862_v26  ;;  %v2448_v31 = vpop.f32.mrb[7].mxu0  ;;  %v2453_v32 = vpop.f32.mrb[13].mxu1 }
 0x5b5   : > { %v1874_v1 = vrot.slane %v1866_v27, %v3533_v35  ;;  %v1881_v33 = vrot.slane %v1867_v28, %v3533_v35  ;;  %v1890_v34 = vrot.slane %v1882_v29, %v3533_v35  ;;  %v1897_v0 = vrot.slane %v1883_v30, %v3533_v35 }
 0x5b7   : > { %v1898_v36 = vcombine.low %v1874_v1, %v1890_v34  ;;  %v1899_v37 = vcombine.high %v1874_v1, %v1890_v34  ;;  %v1914_v38 = vcombine.low %v1881_v33, %v1897_v0  ;;  %v1915_v39 = vcombine.high %v1881_v33, %v1897_v0 }
 0x5b9   : > { %v1906_v43 = vrot.slane %v1898_v36, %v3535_v42  ;;  %v1913_v44 = vrot.slane %v1899_v37, %v3535_v42  ;;  %v1922_v45 = vrot.slane %v1914_v38, %v3535_v42  ;;  %v1929_v46 = vrot.slane %v1915_v39, %v3535_v42 }
 0x5bb   : > { %v1934_v48 = vcombine.low %v1906_v43, %v1913_v44  ;;  %v2349_v49 = vcombine.high %v1906_v43, %v1913_v44  ;;  %v1950_v50 = vcombine.low %v1922_v45, %v1929_v46  ;;  %v2350_v51 = vcombine.high %v1922_v45, %v1929_v46 }
 0x5bd   : > { %v1941_v52 = vrot.slane %v1934_v48, %v3533_v35  ;;  %v1949_v53 = vrot.slane %v2349_v49, %v3533_v35  ;;  %v1957_v54 = vrot.slane %v1950_v50, %v3533_v35  ;;  %v1965_v55 = vrot.slane %v2350_v51, %v3533_v35 }
 0x5bf   : > { %v1967_v56 = vcombine.high %v1941_v52, %v1949_v53  ;;  %v1983_v57 = vcombine.high %v1957_v54, %v1965_v55  ;;  %v1966_v58 = vcombine.low %v1941_v52, %v1949_v53  ;;  %v1982_v59 = vcombine.low %v1957_v54, %v1965_v55 }
 0x5c1   : > { %v1981_v60 = vrot.slane %v1967_v56, %v3535_v42  ;;  %v1997_v61 = vrot.slane %v1983_v57, %v3535_v42  ;;  %v1974_v62 = vrot.slane %v1966_v58, %v3535_v42  ;;  %v1990_v63 = vrot.slane %v1982_v59, %v3535_v42 }
 0x5c3   : > { %v2000_v2 = vcombine.low %v1981_v60, %v1997_v61  ;;  %v1999_v3 = vcombine.high %v1974_v62, %v1990_v63  ;;  %v2001_v4 = vcombine.high %v1981_v60, %v1997_v61  ;;  %v1998_v5 = vcombine.low %v1974_v62, %v1990_v63 }
 0x5c5   : > { %2007 = vrot.lane.b32.xlu0 %v2000_v2, %s3072_s23  ;;  %2003 = vrot.lane.b32.xlu1 %v1999_v3, %s3073_s6 }
 0x5c9   : > { %2011 = vrot.lane.b32.xlu1 %v2001_v4, %s3074_s3 }
 0x637   : > { %v2004_v35 = vpop.permute.xlu1 %2003  ;;  %v2008_v6 = vpop.permute.xlu0 %2007 }
 0x638   : > { %v2014_v7 = vsel %vm1225_vm3, %v1998_v5, %v2004_v35 }
 0x639   : > { %v2015_v42 = vsel %vm633_vm1, %v2014_v7, %v2008_v6 }
 0x63b   : > { %v2012_v8 = vpop.permute.xlu1 %2011 }
 0x63c   : > { %v2017_v9 = vsel %vm2016_vm4, %v2015_v42, %v2012_v8 }
 0x63d   : > { %2463 = vmatmul.mubr.msk.f32.vlgmr.msra.gmra.mrb[8].mxu0 %vm550_vm2, %v2017_v9 }
 0x710   : > { %v2098_v11 = vpop.f32.mrb[8].mxu0 }
 0x711   : > { %v2099_v12 = vadd.f32 %v2351_v10, %v2098_v11  ;;  %v2464_v13 = vpop.f32.mrb[9].mxu0 }
 0x713   : > { %2102 = vst.msk [vmem:[%s536_s11] sm:$0xff] %vm550_vm2, %v2099_v12 }
 0x714   : > { %2957 = shalt.err (!%p2954_p8)
}
 0x715   : > { %s2958_s5 = scalar_lea.hbm %s3662_s21, 128  ;;  %s2962_s23 = scalar_lea.hbm %s3773_s10, 256 }
 0x716   : > { %p2959_p3 = scmp.ne.s32.totalorder %s3662_s21, %s2958_s5  ;;  %p2963_p13 = scmp.lt.u32.totalorder %s3662_s21, %s3773_s10 }
 0x717   : > { %p2964_p4 = scmp.lt.u32.totalorder %s2962_s23, %s2958_s5  ;;  %p2966_p0 = scmp.lt.u32.totalorder %s2958_s5, %s3662_s21 }
 0x718   : > { %p2960_p12 = pnand %p2959_p3, %p3774_p7 }
 0x719   : > { %p2965_p9 = por %p2964_p4, %p2963_p13 }
 0x71a   : > { %p2961_p6 = pneg %p2960_p12 }
 0x71b   : > { %p2967_p11 = por %p2966_p0, %p2965_p9 }
 0x71d   : > { %p2968_p2 = pnand %p2967_p11, %p2961_p6 }
 0x71f   : > { %2971 = shalt.err (!%p2968_p2)
}
 0x720   : > { %2519 = dma.vmem_to_hbm [thread:$0]  (%p3774_p7), %s3664_s16, 128, %s3662_s21, %s2104_s30  }
 0x721 PF: > { %s2130_s1 = sand.u32 1, %s3030_s13   ;;  %p3775_p10 = scmp.ne.s32.totalorder %s3756_s22, 0 }
 0x722   : > { %p3776_p1 = scmp.ge.s32.totalorder %s3050_s18, 2  ;;  %s2131_s11 = scalar_lea.sflag [#allocation4], %s2130_s1 }
 0x724   : > { %p2554_p5 = pnand %p3776_p1, %p3775_p10 }
 0x726   : > { %3025 = dma.done.wait (!%p2554_p5), %s2131_s11, 128  }
 0x727   : > { %3027 = vsyncadd (!%p2554_p5), %s2131_s11, 4294967168  ;;  %s33_s18 = sadd.s32 1, %s3050_s18   ;;  %s3777_s13 = smov %s3034_s14 }
 0x728   : > { %p30_p8 = scmp.ge.s32.totalorder %s33_s18, 4   ;;  %s3778_s14 = smov %s3038_s15 }
 0x729   : > { %s3779_s15 = smov %s3388_s26  ;;  %s3780_s16 = smov %s3046_s17 }
 0x72a   : > { %s3781_s17 = smov %s3783_s29  ;;  %32 = sbr.rel (!%p30_p8) target bundleno = 21 (0x15), region = 150 }
 0x731   :  { %2136 = vsyncpa [#allocation3], 1 }
 0x732   :  { %2138 = vsyncpa [#allocation3 + $0x1], 1 }
 0x733   :  { %2139 = vsyncpa [#allocation6], 1 }
 0x734   :  { %2141 = vsyncpa [#allocation6 + $0x1], 1 }
 0x735   :  { %2142 = vsyncpa [#allocation9], 1 }
 0x736   :  { %2143 = vsyncpa [#allocation12], 1 }
 0x737   :  { %2144 = vsyncpa [#allocation15], 1 }
 0x738   :  { %2145 = vsyncpa [#allocation18], 1 }
 0x739   :  { %2146 = vsyncpa [#allocation4], 1 }
 0x73a   :  { %2148 = vsyncpa [#allocation4 + $0x1], 1 }

</bundles_post_ra>
